<compile_context>
chip_gen: v6e
topology: v6e:2x2x1
jax: 0.10.0
libtpu: 0.0.40
codegen_flags: <defaults>
</compile_context>

<pallas_src>
import functools

import jax
import jax.numpy as jnp
from jax.experimental import pallas as pl
from jax.experimental.pallas import tpu as pltpu

_EPS = 1e-5


def _hardswish(v):
    # x * relu6(x + 3) / 6
    return v * jnp.clip(v + 3.0, 0.0, 6.0) * (1.0 / 6.0)


def bottleneck_kernel(x_ref,
                      w_cat_ref, b_exp_ref, b_sc_ref,
                      w_dw_ref, b_dw_ref,
                      w_pr_ref, b_pr_ref,
                      mask_ref,
                      out_ref,
                      *, H, W, Cmid, Cout):
    HW = H * W
    xm = x_ref[0]                                           # (Cin, HW)

    # ---- fused expand + shortcut 1x1 convs (BN scale folded into weights) --
    cat = jnp.dot(w_cat_ref[...], xm,
                  preferred_element_type=jnp.float32)       # (Cmid+Cout, HW)
    y = _hardswish(cat[:Cmid, :] + b_exp_ref[...])          # (Cmid, HW)
    s = cat[Cmid:, :] + b_sc_ref[...]                       # (Cout, HW)

    # ---- depthwise 3x3, stride 1, pad 1: shifted adds via lane rotation ----
    acc = jnp.zeros((Cmid, HW), jnp.float32)
    for kh in range(3):
        for kw in range(3):
            k = kh * 3 + kw
            dh, dw = kh - 1, kw - 1
            shift = (-(dh * W + dw)) % HW                   # static, >= 0
            shifted = pltpu.roll(y, shift, 1) if shift else y
            # mask_ref[k] (1, HW) zeroes wrapped / out-of-image contributions;
            # w_dw_ref[k] (Cmid, 1) already carries the folded BN scale.
            acc = acc + w_dw_ref[k] * (shifted * mask_ref[k])
    z = _hardswish(acc + b_dw_ref[...])                     # (Cmid, HW)

    # ---- project 1x1 conv + bias, residual add, relu ------------------------
    p = jnp.dot(w_pr_ref[...], z,
                preferred_element_type=jnp.float32) + b_pr_ref[...]
    out_ref[0] = jnp.maximum(p + s, 0.0).astype(out_ref.dtype)


def _fold_bn(w, b, bn):
    """Fold inference-mode BatchNorm into the preceding conv's weight/bias."""
    scale = bn['gamma'] / jnp.sqrt(bn['var'] + _EPS)
    w_f = w * scale.reshape((-1,) + (1,) * (w.ndim - 1))
    b_f = (b - bn['mean']) * scale + bn['beta']
    return w_f.astype(jnp.float32), b_f.astype(jnp.float32)


def _prepare_kernel_params(P, cin):
    w_exp, b_exp = _fold_bn(P['w_exp'], P['b_exp'], P['bn_exp'])   # (Cmid, Cin)
    w_dw, b_dw = _fold_bn(P['w_dw'], P['b_dw'], P['bn_dw'])        # (Cmid, 3, 3)
    w_pr, b_pr = _fold_bn(P['w_pr'], P['b_pr'], P['bn_pr'])        # (Cout, Cmid)
    cout = w_pr.shape[0]
    if P['w_sc'] is None:            # Identity shortcut (stride==1, Cin==Cout)
        w_sc_raw = jnp.eye(cout, cin, dtype=jnp.float32)
        b_sc_raw = jnp.zeros((cout,), jnp.float32)
    else:
        w_sc_raw, b_sc_raw = P['w_sc'], P['b_sc']
    w_sc, b_sc = _fold_bn(w_sc_raw, b_sc_raw, P['bn_sc'])          # (Cout, Cin)

    cmid = w_exp.shape[0]
    return dict(
        w_cat=jnp.concatenate([w_exp, w_sc], axis=0),              # (Cmid+Cout, Cin)
        b_exp=b_exp.reshape(cmid, 1),
        b_sc=b_sc.reshape(cout, 1),
        w_dw=w_dw.reshape(cmid, 9).T.reshape(9, cmid, 1),          # (9, Cmid, 1)
        b_dw=b_dw.reshape(cmid, 1),
        w_pr=w_pr,                                                 # (Cout, Cmid)
        b_pr=b_pr.reshape(cout, 1),
    )


def _border_masks(H, W):
    """(9, 1, H*W) f32 masks zeroing out-of-image taps of the 3x3 depthwise."""
    q = jnp.arange(H * W, dtype=jnp.int32)
    row, col = q // W, q % W
    masks = []
    for kh in range(3):
        for kw in range(3):
            dh, dw = kh - 1, kw - 1
            m = ((row + dh >= 0) & (row + dh <= H - 1) &
                 (col + dw >= 0) & (col + dw <= W - 1))
            masks.append(m)
    return jnp.stack(masks).astype(jnp.float32).reshape(9, 1, H * W)


def bottleneck_forward(x_nchw, params):
    N, Cin, H, W = x_nchw.shape
    HW = H * W
    kp = _prepare_kernel_params(params, Cin)
    Cmid = kp['b_exp'].shape[0]
    Cout = kp['b_pr'].shape[0]

    # NCHW with the spatial dims flattened: channels on sublanes, H*W on the
    # 128-lane axis.  No transposes needed on input or output.
    x = x_nchw.reshape(N, Cin, HW).astype(jnp.float32)
    masks = _border_masks(H, W)

    def full(arr):
        shape = arr.shape
        return pl.BlockSpec(shape, lambda n: (0,) * len(shape))

    kernel = functools.partial(bottleneck_kernel, H=H, W=W, Cmid=Cmid, Cout=Cout)

    out = pl.pallas_call(
        kernel,
        out_shape=jax.ShapeDtypeStruct((N, Cout, HW), jnp.float32),
        grid_spec=pltpu.PrefetchScalarGridSpec(
            num_scalar_prefetch=0,
            grid=(N,),
            in_specs=[
                pl.BlockSpec((1, Cin, HW), lambda n: (n, 0, 0)),
                full(kp['w_cat']), full(kp['b_exp']), full(kp['b_sc']),
                full(kp['w_dw']), full(kp['b_dw']),
                full(kp['w_pr']), full(kp['b_pr']),
                full(masks),
            ],
            out_specs=pl.BlockSpec((1, Cout, HW), lambda n: (n, 0, 0)),
        ),
        compiler_params=pltpu.CompilerParams(
            dimension_semantics=("parallel",)),
    )(x,
      kp['w_cat'], kp['b_exp'], kp['b_sc'],
      kp['w_dw'], kp['b_dw'],
      kp['w_pr'], kp['b_pr'],
      masks)

    return out.reshape(N, Cout, H, W)          # already NCHW


def init_params(key, cin, cout, expansion):
    """Raw (PyTorch-style) parameters: conv weights/biases + BN statistics."""
    cmid = cin * expansion
    keys = iter(jax.random.split(key, 32))

    def nrm(shape, scale=0.2):
        return (scale * jax.random.normal(next(keys), shape)).astype(jnp.float32)

    def bn(c):
        return dict(
            gamma=jax.random.uniform(next(keys), (c,), minval=0.5, maxval=1.5).astype(jnp.float32),
            beta=(0.1 * jax.random.normal(next(keys), (c,))).astype(jnp.float32),
            mean=(0.1 * jax.random.normal(next(keys), (c,))).astype(jnp.float32),
            var=jax.random.uniform(next(keys), (c,), minval=0.5, maxval=1.5).astype(jnp.float32),
        )

    P = dict(
        w_exp=nrm((cmid, cin)), b_exp=nrm((cmid,), 0.05), bn_exp=bn(cmid),
        w_dw=nrm((cmid, 3, 3)), b_dw=nrm((cmid,), 0.05), bn_dw=bn(cmid),
        w_pr=nrm((cout, cmid)), b_pr=nrm((cout,), 0.05), bn_pr=bn(cout),
        bn_sc=bn(cout),
    )
    if cin != cout:                      # stride==1 assumed (see TODO above)
        P['w_sc'] = nrm((cout, cin))
        P['b_sc'] = nrm((cout,), 0.05)
    else:
        P['w_sc'] = None
        P['b_sc'] = None
    return P


def ref_forward(x, P):
    """Plain-JAX reference of the PyTorch module (eval-mode BN), NCHW."""
    def bn_apply(v, bn):
        sh = (1, -1, 1, 1)
        return ((v - bn['mean'].reshape(sh))
                / jnp.sqrt(bn['var'].reshape(sh) + _EPS)
                * bn['gamma'].reshape(sh) + bn['beta'].reshape(sh))

    def conv1x1(v, w, b):
        return jnp.einsum('nchw,dc->ndhw', v, w) + b.reshape(1, -1, 1, 1)

    def hswish(v):
        return v * jnp.clip(v + 3.0, 0.0, 6.0) / 6.0

    N, Cin, H, W = x.shape
    y = hswish(bn_apply(conv1x1(x, P['w_exp'], P['b_exp']), P['bn_exp']))
    yp = jnp.pad(y, ((0, 0), (0, 0), (1, 1), (1, 1)))
    acc = jnp.zeros_like(y)
    for kh in range(3):
        for kw in range(3):
            acc = acc + (P['w_dw'][:, kh, kw].reshape(1, -1, 1, 1)
                         * yp[:, :, kh:kh + H, kw:kw + W])
    z = hswish(bn_apply(acc + P['b_dw'].reshape(1, -1, 1, 1), P['bn_dw']))
    p = bn_apply(conv1x1(z, P['w_pr'], P['b_pr']), P['bn_pr'])
    s = x if P['w_sc'] is None else conv1x1(x, P['w_sc'], P['b_sc'])
    s = bn_apply(s, P['bn_sc'])
    return jnp.maximum(p + s, 0.0)


if __name__ == "__main__":
    N, Cin, H, W = 2, 4, 16, 16
    Cout, stride, expansion = 8, 1, 4   # stride=1, Cin != Cout -> shortcut conv

    key = jax.random.PRNGKey(0)
    kx, kp = jax.random.split(key)
    x = jax.random.normal(kx, (N, Cin, H, W), dtype=jnp.float32)
    params = init_params(kp, Cin, Cout, expansion)

    out = bottleneck_forward(x, params)
    jax.block_until_ready(out)

    ref = ref_forward(x, params)
    assert out.shape == (N, Cout, H, W)
    max_err = float(jnp.max(jnp.abs(out - ref)))
    assert jnp.allclose(out, ref, rtol=1e-2, atol=1e-2), max_err

    print("KERNEL_OK")
</pallas_src>

<mosaic_0001>
module attributes {stable_mosaic.version = 11 : i64} {
  func.func @bottleneck_kernel(%arg0: i32, %arg1: memref<1x4x256xf32, #tpu.memory_space<vmem>>, %arg2: memref<24x4xf32, #tpu.memory_space<vmem>>, %arg3: memref<16x1xf32, #tpu.memory_space<vmem>>, %arg4: memref<8x1xf32, #tpu.memory_space<vmem>>, %arg5: memref<9x16x1xf32, #tpu.memory_space<vmem>>, %arg6: memref<16x1xf32, #tpu.memory_space<vmem>>, %arg7: memref<8x16xf32, #tpu.memory_space<vmem>>, %arg8: memref<8x1xf32, #tpu.memory_space<vmem>>, %arg9: memref<9x1x256xf32, #tpu.memory_space<vmem>>, %arg10: memref<1x8x256xf32, #tpu.memory_space<vmem>>) attributes {dimension_semantics = [#tpu.dimension_semantics<parallel>], iteration_bounds = array<i64: 2>, scalar_prefetch = 0 : i64, scratch_operands = 0 : i64, tpu.core_type = #tpu.core_type<tc>, window_params = [{transform_indices = @transform_0, window_bounds = array<i64: 1, 4, 256>}, {pipeline_mode = #tpu.pipeline_mode<synchronous>, transform_indices = @transform_1, window_bounds = array<i64: 24, 4>}, {pipeline_mode = #tpu.pipeline_mode<synchronous>, transform_indices = @transform_2, window_bounds = array<i64: 16, 1>}, {pipeline_mode = #tpu.pipeline_mode<synchronous>, transform_indices = @transform_3, window_bounds = array<i64: 8, 1>}, {pipeline_mode = #tpu.pipeline_mode<synchronous>, transform_indices = @transform_4, window_bounds = array<i64: 9, 16, 1>}, {pipeline_mode = #tpu.pipeline_mode<synchronous>, transform_indices = @transform_5, window_bounds = array<i64: 16, 1>}, {pipeline_mode = #tpu.pipeline_mode<synchronous>, transform_indices = @transform_6, window_bounds = array<i64: 8, 16>}, {pipeline_mode = #tpu.pipeline_mode<synchronous>, transform_indices = @transform_7, window_bounds = array<i64: 8, 1>}, {pipeline_mode = #tpu.pipeline_mode<synchronous>, transform_indices = @transform_8, window_bounds = array<i64: 9, 1, 256>}, {transform_indices = @transform_9, window_bounds = array<i64: 1, 8, 256>}]} {
    %c0 = arith.constant 0 : index
    %c0_0 = arith.constant 0 : index
    %c0_1 = arith.constant 0 : index
    %0 = vector.load %arg1[%c0, %c0_0, %c0_1] : memref<1x4x256xf32, #tpu.memory_space<vmem>>, vector<1x4x256xf32>
    %1 = vector.shape_cast %0 : vector<1x4x256xf32> to vector<4x256xf32>
    %c0_2 = arith.constant 0 : index
    %c0_3 = arith.constant 0 : index
    %2 = vector.load %arg2[%c0_2, %c0_3] : memref<24x4xf32, #tpu.memory_space<vmem>>, vector<24x4xf32>
    %cst = arith.constant dense<0.000000e+00> : vector<24x256xf32>
    %3 = tpu.matmul %2, %1, %cst {dimension_numbers = #tpu.dot_dimension_numbers<[1], [0], [0], [1], [0, 0, 1, 1], [], []>} : vector<24x4xf32>, vector<4x256xf32>, vector<24x256xf32> -> vector<24x256xf32>
    %4 = vector.extract_strided_slice %3 {offsets = [0, 0], sizes = [16, 256], strides = [1, 1]} : vector<24x256xf32> to vector<16x256xf32>
    %c0_4 = arith.constant 0 : index
    %c0_5 = arith.constant 0 : index
    %5 = vector.load %arg3[%c0_4, %c0_5] : memref<16x1xf32, #tpu.memory_space<vmem>>, vector<16x1xf32>
    %6 = vector.broadcast %5 : vector<16x1xf32> to vector<16x256xf32>
    %7 = arith.addf %4, %6 : vector<16x256xf32>
    %cst_6 = arith.constant 3.000000e+00 : f32
    %8 = vector.broadcast %cst_6 : f32 to vector<16x256xf32>
    %9 = arith.addf %7, %8 : vector<16x256xf32>
    %cst_7 = arith.constant 0.000000e+00 : f32
    %cst_8 = arith.constant 6.000000e+00 : f32
    %10 = vector.broadcast %cst_7 : f32 to vector<16x256xf32>
    %11 = arith.maximumf %10, %9 : vector<16x256xf32>
    %12 = vector.broadcast %cst_8 : f32 to vector<16x256xf32>
    %13 = arith.minimumf %12, %11 : vector<16x256xf32>
    %14 = arith.mulf %7, %13 : vector<16x256xf32>
    %cst_9 = arith.constant 0.166666672 : f32
    %15 = vector.broadcast %cst_9 : f32 to vector<16x256xf32>
    %16 = arith.mulf %14, %15 : vector<16x256xf32>
    %17 = vector.extract_strided_slice %3 {offsets = [16, 0], sizes = [8, 256], strides = [1, 1]} : vector<24x256xf32> to vector<8x256xf32>
    %c0_10 = arith.constant 0 : index
    %c0_11 = arith.constant 0 : index
    %18 = vector.load %arg4[%c0_10, %c0_11] : memref<8x1xf32, #tpu.memory_space<vmem>>, vector<8x1xf32>
    %19 = vector.broadcast %18 : vector<8x1xf32> to vector<8x256xf32>
    %20 = arith.addf %17, %19 : vector<8x256xf32>
    %cst_12 = arith.constant 0.000000e+00 : f32
    %21 = vector.broadcast %cst_12 : f32 to vector<16x256xf32>
    %c17_i32 = arith.constant 17 : i32
    %22 = tpu.dynamic_rotate %16 by %c17_i32 dim 1 : vector<16x256xf32>, i32 -> vector<16x256xf32>
    %c0_13 = arith.constant 0 : index
    %c0_14 = arith.constant 0 : index
    %c0_15 = arith.constant 0 : index
    %23 = vector.load %arg5[%c0_13, %c0_14, %c0_15] : memref<9x16x1xf32, #tpu.memory_space<vmem>>, vector<1x16x1xf32>
    %24 = vector.shape_cast %23 : vector<1x16x1xf32> to vector<16x1xf32>
    %c0_16 = arith.constant 0 : index
    %c0_17 = arith.constant 0 : index
    %c0_18 = arith.constant 0 : index
    %25 = vector.load %arg9[%c0_16, %c0_17, %c0_18] : memref<9x1x256xf32, #tpu.memory_space<vmem>>, vector<1x1x256xf32>
    %26 = vector.shape_cast %25 : vector<1x1x256xf32> to vector<1x256xf32>
    %27 = vector.broadcast %26 : vector<1x256xf32> to vector<16x256xf32>
    %28 = arith.mulf %22, %27 : vector<16x256xf32>
    %29 = vector.broadcast %24 : vector<16x1xf32> to vector<16x256xf32>
    %30 = arith.mulf %29, %28 : vector<16x256xf32>
    %31 = arith.addf %21, %30 : vector<16x256xf32>
    %c16_i32 = arith.constant 16 : i32
    %32 = tpu.dynamic_rotate %16 by %c16_i32 dim 1 : vector<16x256xf32>, i32 -> vector<16x256xf32>
    %c1 = arith.constant 1 : index
    %c0_19 = arith.constant 0 : index
    %c0_20 = arith.constant 0 : index
    %33 = vector.load %arg5[%c1, %c0_19, %c0_20] : memref<9x16x1xf32, #tpu.memory_space<vmem>>, vector<1x16x1xf32>
    %34 = vector.shape_cast %33 : vector<1x16x1xf32> to vector<16x1xf32>
    %c1_21 = arith.constant 1 : index
    %c0_22 = arith.constant 0 : index
    %c0_23 = arith.constant 0 : index
    %35 = vector.load %arg9[%c1_21, %c0_22, %c0_23] : memref<9x1x256xf32, #tpu.memory_space<vmem>>, vector<1x1x256xf32>
    %36 = vector.shape_cast %35 : vector<1x1x256xf32> to vector<1x256xf32>
    %37 = vector.broadcast %36 : vector<1x256xf32> to vector<16x256xf32>
    %38 = arith.mulf %32, %37 : vector<16x256xf32>
    %39 = vector.broadcast %34 : vector<16x1xf32> to vector<16x256xf32>
    %40 = arith.mulf %39, %38 : vector<16x256xf32>
    %41 = arith.addf %31, %40 : vector<16x256xf32>
    %c15_i32 = arith.constant 15 : i32
    %42 = tpu.dynamic_rotate %16 by %c15_i32 dim 1 : vector<16x256xf32>, i32 -> vector<16x256xf32>
    %c2 = arith.constant 2 : index
    %c0_24 = arith.constant 0 : index
    %c0_25 = arith.constant 0 : index
    %43 = vector.load %arg5[%c2, %c0_24, %c0_25] : memref<9x16x1xf32, #tpu.memory_space<vmem>>, vector<1x16x1xf32>
    %44 = vector.shape_cast %43 : vector<1x16x1xf32> to vector<16x1xf32>
    %c2_26 = arith.constant 2 : index
    %c0_27 = arith.constant 0 : index
    %c0_28 = arith.constant 0 : index
    %45 = vector.load %arg9[%c2_26, %c0_27, %c0_28] : memref<9x1x256xf32, #tpu.memory_space<vmem>>, vector<1x1x256xf32>
    %46 = vector.shape_cast %45 : vector<1x1x256xf32> to vector<1x256xf32>
    %47 = vector.broadcast %46 : vector<1x256xf32> to vector<16x256xf32>
    %48 = arith.mulf %42, %47 : vector<16x256xf32>
    %49 = vector.broadcast %44 : vector<16x1xf32> to vector<16x256xf32>
    %50 = arith.mulf %49, %48 : vector<16x256xf32>
    %51 = arith.addf %41, %50 : vector<16x256xf32>
    %c1_i32 = arith.constant 1 : i32
    %52 = tpu.dynamic_rotate %16 by %c1_i32 dim 1 : vector<16x256xf32>, i32 -> vector<16x256xf32>
    %c3 = arith.constant 3 : index
    %c0_29 = arith.constant 0 : index
    %c0_30 = arith.constant 0 : index
    %53 = vector.load %arg5[%c3, %c0_29, %c0_30] : memref<9x16x1xf32, #tpu.memory_space<vmem>>, vector<1x16x1xf32>
    %54 = vector.shape_cast %53 : vector<1x16x1xf32> to vector<16x1xf32>
    %c3_31 = arith.constant 3 : index
    %c0_32 = arith.constant 0 : index
    %c0_33 = arith.constant 0 : index
    %55 = vector.load %arg9[%c3_31, %c0_32, %c0_33] : memref<9x1x256xf32, #tpu.memory_space<vmem>>, vector<1x1x256xf32>
    %56 = vector.shape_cast %55 : vector<1x1x256xf32> to vector<1x256xf32>
    %57 = vector.broadcast %56 : vector<1x256xf32> to vector<16x256xf32>
    %58 = arith.mulf %52, %57 : vector<16x256xf32>
    %59 = vector.broadcast %54 : vector<16x1xf32> to vector<16x256xf32>
    %60 = arith.mulf %59, %58 : vector<16x256xf32>
    %61 = arith.addf %51, %60 : vector<16x256xf32>
    %c4 = arith.constant 4 : index
    %c0_34 = arith.constant 0 : index
    %c0_35 = arith.constant 0 : index
    %62 = vector.load %arg5[%c4, %c0_34, %c0_35] : memref<9x16x1xf32, #tpu.memory_space<vmem>>, vector<1x16x1xf32>
    %63 = vector.shape_cast %62 : vector<1x16x1xf32> to vector<16x1xf32>
    %c4_36 = arith.constant 4 : index
    %c0_37 = arith.constant 0 : index
    %c0_38 = arith.constant 0 : index
    %64 = vector.load %arg9[%c4_36, %c0_37, %c0_38] : memref<9x1x256xf32, #tpu.memory_space<vmem>>, vector<1x1x256xf32>
    %65 = vector.shape_cast %64 : vector<1x1x256xf32> to vector<1x256xf32>
    %66 = vector.broadcast %65 : vector<1x256xf32> to vector<16x256xf32>
    %67 = arith.mulf %16, %66 : vector<16x256xf32>
    %68 = vector.broadcast %63 : vector<16x1xf32> to vector<16x256xf32>
    %69 = arith.mulf %68, %67 : vector<16x256xf32>
    %70 = arith.addf %61, %69 : vector<16x256xf32>
    %c255_i32 = arith.constant 255 : i32
    %71 = tpu.dynamic_rotate %16 by %c255_i32 dim 1 : vector<16x256xf32>, i32 -> vector<16x256xf32>
    %c5 = arith.constant 5 : index
    %c0_39 = arith.constant 0 : index
    %c0_40 = arith.constant 0 : index
    %72 = vector.load %arg5[%c5, %c0_39, %c0_40] : memref<9x16x1xf32, #tpu.memory_space<vmem>>, vector<1x16x1xf32>
    %73 = vector.shape_cast %72 : vector<1x16x1xf32> to vector<16x1xf32>
    %c5_41 = arith.constant 5 : index
    %c0_42 = arith.constant 0 : index
    %c0_43 = arith.constant 0 : index
    %74 = vector.load %arg9[%c5_41, %c0_42, %c0_43] : memref<9x1x256xf32, #tpu.memory_space<vmem>>, vector<1x1x256xf32>
    %75 = vector.shape_cast %74 : vector<1x1x256xf32> to vector<1x256xf32>
    %76 = vector.broadcast %75 : vector<1x256xf32> to vector<16x256xf32>
    %77 = arith.mulf %71, %76 : vector<16x256xf32>
    %78 = vector.broadcast %73 : vector<16x1xf32> to vector<16x256xf32>
    %79 = arith.mulf %78, %77 : vector<16x256xf32>
    %80 = arith.addf %70, %79 : vector<16x256xf32>
    %c241_i32 = arith.constant 241 : i32
    %81 = tpu.dynamic_rotate %16 by %c241_i32 dim 1 : vector<16x256xf32>, i32 -> vector<16x256xf32>
    %c6 = arith.constant 6 : index
    %c0_44 = arith.constant 0 : index
    %c0_45 = arith.constant 0 : index
    %82 = vector.load %arg5[%c6, %c0_44, %c0_45] : memref<9x16x1xf32, #tpu.memory_space<vmem>>, vector<1x16x1xf32>
    %83 = vector.shape_cast %82 : vector<1x16x1xf32> to vector<16x1xf32>
    %c6_46 = arith.constant 6 : index
    %c0_47 = arith.constant 0 : index
    %c0_48 = arith.constant 0 : index
    %84 = vector.load %arg9[%c6_46, %c0_47, %c0_48] : memref<9x1x256xf32, #tpu.memory_space<vmem>>, vector<1x1x256xf32>
    %85 = vector.shape_cast %84 : vector<1x1x256xf32> to vector<1x256xf32>
    %86 = vector.broadcast %85 : vector<1x256xf32> to vector<16x256xf32>
    %87 = arith.mulf %81, %86 : vector<16x256xf32>
    %88 = vector.broadcast %83 : vector<16x1xf32> to vector<16x256xf32>
    %89 = arith.mulf %88, %87 : vector<16x256xf32>
    %90 = arith.addf %80, %89 : vector<16x256xf32>
    %c240_i32 = arith.constant 240 : i32
    %91 = tpu.dynamic_rotate %16 by %c240_i32 dim 1 : vector<16x256xf32>, i32 -> vector<16x256xf32>
    %c7 = arith.constant 7 : index
    %c0_49 = arith.constant 0 : index
    %c0_50 = arith.constant 0 : index
    %92 = vector.load %arg5[%c7, %c0_49, %c0_50] : memref<9x16x1xf32, #tpu.memory_space<vmem>>, vector<1x16x1xf32>
    %93 = vector.shape_cast %92 : vector<1x16x1xf32> to vector<16x1xf32>
    %c7_51 = arith.constant 7 : index
    %c0_52 = arith.constant 0 : index
    %c0_53 = arith.constant 0 : index
    %94 = vector.load %arg9[%c7_51, %c0_52, %c0_53] : memref<9x1x256xf32, #tpu.memory_space<vmem>>, vector<1x1x256xf32>
    %95 = vector.shape_cast %94 : vector<1x1x256xf32> to vector<1x256xf32>
    %96 = vector.broadcast %95 : vector<1x256xf32> to vector<16x256xf32>
    %97 = arith.mulf %91, %96 : vector<16x256xf32>
    %98 = vector.broadcast %93 : vector<16x1xf32> to vector<16x256xf32>
    %99 = arith.mulf %98, %97 : vector<16x256xf32>
    %100 = arith.addf %90, %99 : vector<16x256xf32>
    %c239_i32 = arith.constant 239 : i32
    %101 = tpu.dynamic_rotate %16 by %c239_i32 dim 1 : vector<16x256xf32>, i32 -> vector<16x256xf32>
    %c8 = arith.constant 8 : index
    %c0_54 = arith.constant 0 : index
    %c0_55 = arith.constant 0 : index
    %102 = vector.load %arg5[%c8, %c0_54, %c0_55] : memref<9x16x1xf32, #tpu.memory_space<vmem>>, vector<1x16x1xf32>
    %103 = vector.shape_cast %102 : vector<1x16x1xf32> to vector<16x1xf32>
    %c8_56 = arith.constant 8 : index
    %c0_57 = arith.constant 0 : index
    %c0_58 = arith.constant 0 : index
    %104 = vector.load %arg9[%c8_56, %c0_57, %c0_58] : memref<9x1x256xf32, #tpu.memory_space<vmem>>, vector<1x1x256xf32>
    %105 = vector.shape_cast %104 : vector<1x1x256xf32> to vector<1x256xf32>
    %106 = vector.broadcast %105 : vector<1x256xf32> to vector<16x256xf32>
    %107 = arith.mulf %101, %106 : vector<16x256xf32>
    %108 = vector.broadcast %103 : vector<16x1xf32> to vector<16x256xf32>
    %109 = arith.mulf %108, %107 : vector<16x256xf32>
    %110 = arith.addf %100, %109 : vector<16x256xf32>
    %c0_59 = arith.constant 0 : index
    %c0_60 = arith.constant 0 : index
    %111 = vector.load %arg6[%c0_59, %c0_60] : memref<16x1xf32, #tpu.memory_space<vmem>>, vector<16x1xf32>
    %112 = vector.broadcast %111 : vector<16x1xf32> to vector<16x256xf32>
    %113 = arith.addf %110, %112 : vector<16x256xf32>
    %cst_61 = arith.constant 3.000000e+00 : f32
    %114 = vector.broadcast %cst_61 : f32 to vector<16x256xf32>
    %115 = arith.addf %113, %114 : vector<16x256xf32>
    %cst_62 = arith.constant 0.000000e+00 : f32
    %cst_63 = arith.constant 6.000000e+00 : f32
    %116 = vector.broadcast %cst_62 : f32 to vector<16x256xf32>
    %117 = arith.maximumf %116, %115 : vector<16x256xf32>
    %118 = vector.broadcast %cst_63 : f32 to vector<16x256xf32>
    %119 = arith.minimumf %118, %117 : vector<16x256xf32>
    %120 = arith.mulf %113, %119 : vector<16x256xf32>
    %cst_64 = arith.constant 0.166666672 : f32
    %121 = vector.broadcast %cst_64 : f32 to vector<16x256xf32>
    %122 = arith.mulf %120, %121 : vector<16x256xf32>
    %c0_65 = arith.constant 0 : index
    %c0_66 = arith.constant 0 : index
    %123 = vector.load %arg7[%c0_65, %c0_66] : memref<8x16xf32, #tpu.memory_space<vmem>>, vector<8x16xf32>
    %cst_67 = arith.constant dense<0.000000e+00> : vector<8x256xf32>
    %124 = tpu.matmul %123, %122, %cst_67 {dimension_numbers = #tpu.dot_dimension_numbers<[1], [0], [0], [1], [0, 0, 1, 1], [], []>} : vector<8x16xf32>, vector<16x256xf32>, vector<8x256xf32> -> vector<8x256xf32>
    %c0_68 = arith.constant 0 : index
    %c0_69 = arith.constant 0 : index
    %125 = vector.load %arg8[%c0_68, %c0_69] : memref<8x1xf32, #tpu.memory_space<vmem>>, vector<8x1xf32>
    %126 = vector.broadcast %125 : vector<8x1xf32> to vector<8x256xf32>
    %127 = arith.addf %124, %126 : vector<8x256xf32>
    %128 = arith.addf %127, %20 : vector<8x256xf32>
    %cst_70 = arith.constant 0.000000e+00 : f32
    %129 = vector.broadcast %cst_70 : f32 to vector<8x256xf32>
    %130 = arith.maximumf %128, %129 : vector<8x256xf32>
    %c0_71 = arith.constant 0 : index
    %c0_72 = arith.constant 0 : index
    %c0_73 = arith.constant 0 : index
    %131 = vector.load %arg10[%c0_71, %c0_72, %c0_73] : memref<1x8x256xf32, #tpu.memory_space<vmem>>, vector<1x8x256xf32>
    %132 = vector.shape_cast %131 : vector<1x8x256xf32> to vector<8x256xf32>
    %133 = vector.shape_cast %130 : vector<8x256xf32> to vector<1x8x256xf32>
    tpu.vector_store %arg10[%c0_71, %c0_72, %c0_73], %133 {strides = array<i32>} : memref<1x8x256xf32, #tpu.memory_space<vmem>>, vector<1x8x256xf32>,
    return
  }
  func.func @transform_0(%arg0: i32) -> (i32, i32, i32) {
    %c0_i32 = arith.constant 0 : i32
    %c0_i32_0 = arith.constant 0 : i32
    %c0_i32_1 = arith.constant 0 : i32
    return %arg0, %c0_i32, %c0_i32_0 : i32, i32, i32
  }
  func.func @transform_1(%arg0: i32) -> (i32, i32) {
    %c0_i32 = arith.constant 0 : i32
    %c0_i32_0 = arith.constant 0 : i32
    %c0_i32_1 = arith.constant 0 : i32
    return %c0_i32, %c0_i32_0 : i32, i32
  }
  func.func @transform_2(%arg0: i32) -> (i32, i32) {
    %c0_i32 = arith.constant 0 : i32
    %c0_i32_0 = arith.constant 0 : i32
    %c0_i32_1 = arith.constant 0 : i32
    return %c0_i32, %c0_i32_0 : i32, i32
  }
  func.func @transform_3(%arg0: i32) -> (i32, i32) {
    %c0_i32 = arith.constant 0 : i32
    %c0_i32_0 = arith.constant 0 : i32
    %c0_i32_1 = arith.constant 0 : i32
    return %c0_i32, %c0_i32_0 : i32, i32
  }
  func.func @transform_4(%arg0: i32) -> (i32, i32, i32) {
    %c0_i32 = arith.constant 0 : i32
    %c0_i32_0 = arith.constant 0 : i32
    %c0_i32_1 = arith.constant 0 : i32
    %c0_i32_2 = arith.constant 0 : i32
    return %c0_i32, %c0_i32_0, %c0_i32_1 : i32, i32, i32
  }
  func.func @transform_5(%arg0: i32) -> (i32, i32) {
    %c0_i32 = arith.constant 0 : i32
    %c0_i32_0 = arith.constant 0 : i32
    %c0_i32_1 = arith.constant 0 : i32
    return %c0_i32, %c0_i32_0 : i32, i32
  }
  func.func @transform_6(%arg0: i32) -> (i32, i32) {
    %c0_i32 = arith.constant 0 : i32
    %c0_i32_0 = arith.constant 0 : i32
    %c0_i32_1 = arith.constant 0 : i32
    return %c0_i32, %c0_i32_0 : i32, i32
  }
  func.func @transform_7(%arg0: i32) -> (i32, i32) {
    %c0_i32 = arith.constant 0 : i32
    %c0_i32_0 = arith.constant 0 : i32
    %c0_i32_1 = arith.constant 0 : i32
    return %c0_i32, %c0_i32_0 : i32, i32
  }
  func.func @transform_8(%arg0: i32) -> (i32, i32, i32) {
    %c0_i32 = arith.constant 0 : i32
    %c0_i32_0 = arith.constant 0 : i32
    %c0_i32_1 = arith.constant 0 : i32
    %c0_i32_2 = arith.constant 0 : i32
    return %c0_i32, %c0_i32_0, %c0_i32_1 : i32, i32, i32
  }
  func.func @transform_9(%arg0: i32) -> (i32, i32, i32) {
    %c0_i32 = arith.constant 0 : i32
    %c0_i32_0 = arith.constant 0 : i32
    %c0_i32_1 = arith.constant 0 : i32
    return %arg0, %c0_i32, %c0_i32_0 : i32, i32, i32
  }
}

</mosaic_0001>

<bundles_post_ra>
// kernel: tpu_custom_call.1
= control target key start
LH: loop header
LB: loop body
LE: loop exit
PB: predicated region body
PF: predicated region fallthrough
CT: control target
= control target key end

     0   :  { %14 = vsyncpa [#allocation3], 0  ;;  %s1853_s0 = inlined_call_operand.vmem [shape: f32[2,4,256], index: 0, kind: input, shape index: {}]   ;;  %s1854_s1 = inlined_call_operand.vmem [shape: f32[24,4], index: 1, kind: input, shape index: {}]   ;;  %s1855_s2 = inlined_call_operand.vmem [shape: f32[16,1], index: 2, kind: input, shape index: {}]   ;;  %s1856_s3 = inlined_call_operand.vmem [shape: f32[8,1], index: 3, kind: input, shape index: {}]   ;;  %s1857_s4 = inlined_call_operand.vmem [shape: f32[9,16,1], index: 4, kind: input, shape index: {}]   ;;  %s1858_s5 = inlined_call_operand.vmem [shape: f32[16,1], index: 5, kind: input, shape index: {}]   ;;  %s1859_s6 = inlined_call_operand.vmem [shape: f32[8,16], index: 6, kind: input, shape index: {}]   ;;  %s1860_s7 = inlined_call_operand.vmem [shape: f32[8,1], index: 7, kind: input, shape index: {}]   ;;  %s1861_s8 = inlined_call_operand.vmem [shape: f32[9,1,256], index: 8, kind: input, shape index: {}]   ;;  %s1862_s9 = inlined_call_operand.hbm [shape: f32[2,8,256], index: 9, kind: output, shape index: {}]  }
   0x1   :  { %16 = vsyncpa [#allocation3 + $0x1], 0  ;;  %s1344_s30 = smov 0   ;;  %s1346_s10 = smov 0  }
   0x2   :  { %s1348_s11 = smov 0   ;;  %s1350_s12 = smov 0  }
   0x3 LB: > { %s1365_s13 = sadd.s32 4294967295, %s1281_s12   ;;  %s1123_s14 = sadd.s32 4294967294, %s1281_s12   ;;  %s1281_s12 = sphi %s1350_s12, %s1868_s12   ;;  %s1277_s11 = sphi %s1348_s11, %s1867_s11   ;;  %s1273_s10 = sphi %s1346_s10, %s1866_s10   ;;  %s1269_s30 = sphi %s1344_s30, %s1865_s30  }
   0x4   : > { %s1369_s15 = sadd.s32 1, %s1281_s12   ;;  %s223_s16 = sadd.s32 1, %s1277_s11 }
   0x5   : > { %s220_s17 = ssub.s32 %s1281_s12, %s1369_s15  ;;  %p233_p0 = scmp.ne.s32.totalorder %s1277_s11, %s1273_s10 }
   0x6   : > { %p221_p1 = scmp.eq.s32.totalorder %s220_s17, 0  ;;  %p234_p2 = scmp.eq.s32.totalorder %s1365_s13, 1 }
   0x7   : > { %p239_p3 = scmp.ne.s32.totalorder %s1273_s10, %s1269_s30  ;;  %p240_p4 = scmp.eq.s32.totalorder %s1123_s14, 1 }
   0x8   : > { %s1380_s18 = scalar_select %p221_p1, %s1277_s11, %s223_s16  }
   0x9   : > { %p1382_p5 = por %p234_p2, %p233_p0  ;;  %p1386_p6 = por %p240_p4, %p239_p3 }
   0xa   : > { %p1126_p7 = scmp.ge.s32.totalorder %s1281_s12, 1  ;;  %p290_p8 = scmp.lt.s32.totalorder %s1281_s12, 3 }
   0xc   : > { %p291_p9 = pnand %p1126_p7, %p290_p8 }
   0xd   : > { %p326_p10 = scmp.lt.s32.totalorder (!%p291_p9), %s1365_s13, 1  ;;  %s1285_s25 = smov (!%p291_p9), 17  }
   0xe   : > { %294 = sbr.rel (%p291_p9) target bundleno = 656 (0x290), region = 56  ;;  %s1286_s26 = smov (!%p291_p9), 16  }
   0xf   : > { %s1288_s27 = smov (!%p291_p9), 1   ;;  %s1289_s28 = smov (!%p291_p9), 127  }
  0x10   : > { %s1290_s29 = smov (!%p291_p9), 113   ;;  %s1291_s14 = smov (!%p291_p9), 112  }
  0x11   : > { %s1293_s22 = smov (!%p291_p9), [#allocation2]  }
  0x13   : > { %v1283_v0 = vmov 0.0   ;;  %v436_v1 = vld [vmem:[%s1855_s2 + $0x8] sm:$0xff]  ;;  %s327_s23 = scalar_select %p326_p10, %s1365_s13, 1  ;;  %v1284_v2 = vmov 0   ;;  %v435_v3 = vld [vmem:[%s1855_s2] sm:$0xff]  ;;  %vm347_vm0 = vcmask 1043456   ;;  %v487_v30 = vlaneseq }
  0x14   : > { %416 = vmatprep.mubr.f32.mxu0 %v1283_v0  ;;  %428 = vmatprep.mubr.f32.mxu1 %v1283_v0  ;;  %v495_v4 = vld [vmem:[%s1857_s4 + $0x8] sm:$0xff]  ;;  %v1136_v6 = vld [vmem:[%s1857_s4 + $0x18] sm:$0xff]  ;;  %v332_v8 = vld [vmem:[%s1854_s1] sm:$0xff]  ;;  %vm337_vm1 = vcmask 31744   ;;  %vm968_vm10 = vcmask 130048  }
  0x15   : > { %1218 = vset.pattern.permute.xlu0 %v1284_v2  ;;  %1219 = vset.pattern.permute.xlu1 %v1284_v2  ;;  %s1165_s24 = sshll.u32 %s327_s23, 3  ;;  %v494_v9 = vld [vmem:[%s1857_s4] sm:$0xff]  ;;  %v1135_v10 = vld [vmem:[%s1857_s4 + $0x10] sm:$0xff]  ;;  %v333_v11 = vld [vmem:[%s1854_s1 + $0x8] sm:$0xff]  ;;  %v499_v35 = vshrl.u32 %v487_v30, 7 }
  0x16   : > { %444 = vperm.xlu0 %1218, %v436_v1   ;;  %s330_s16 = scalar_lea.vmem %s1853_s0, %s1165_s24  ;;  %519 = vperm.xlu1 %1219, %v495_v4   ;;  %v1139_v12 = vld [vmem:[%s1857_s4 + $0x28] sm:$0xff]  ;;  %v1138_v13 = vld [vmem:[%s1857_s4 + $0x20] sm:$0xff]  ;;  %v1142_v14 = vld [vmem:[%s1857_s4 + $0x38] sm:$0xff]  ;;  %s1287_s24 = smov 15  }
  0x17   : > { %v331_v5 = vld [vmem:[%s330_s16] sm:$0xff]  ;;  %v1141_v15 = vld [vmem:[%s1857_s4 + $0x30] sm:$0xff]  ;;  %v1145_v16 = vld [vmem:[%s1857_s4 + $0x48] sm:$0xff]  ;;  %v1479_v41 = vsub.s32 0, %v499_v35  ;;  %v1486_v46 = vsub.s32 1, %v499_v35  ;;  %s1292_s16 = smov 111  }
  0x18   : > { %v336_v7 = vcombine.high %v331_v5, %v331_v5  ;;  %v1144_v17 = vld [vmem:[%s1857_s4 + $0x40] sm:$0xff]  ;;  %v1148_v18 = vld [vmem:[%s1857_s4 + $0x58] sm:$0xff]  ;;  %v1147_v19 = vld [vmem:[%s1857_s4 + $0x50] sm:$0xff] }
  0x19   : > { %v1151_v20 = vld [vmem:[%s1857_s4 + $0x68] sm:$0xff]  ;;  %v1150_v21 = vld [vmem:[%s1857_s4 + $0x60] sm:$0xff]  ;;  %v1154_v22 = vld [vmem:[%s1857_s4 + $0x78] sm:$0xff] }
  0x1a   : > { %439 = vperm.xlu0 %1218, %v435_v3   ;;  %1130 = vmatprep.subr.msk.mxu0 %vm347_vm0, %v336_v7  ;;  %v1153_v23 = vld [vmem:[%s1857_s4 + $0x70] sm:$0xff]  ;;  %v1157_v24 = vld [vmem:[%s1857_s4 + $0x88] sm:$0xff] }
  0x1b   : > { %570 = vperm.xlu1 %1219, %v1136_v6   ;;  %1131 = vmatpush1.msk.msra.mxu0 %vm347_vm0, %v331_v5  ;;  %v334_v25 = vld [vmem:[%s1854_s1 + $0x10] sm:$0xff]  ;;  %v1146_v43 = vld [vmem:[%s1861_s8 + $0x8] sm:$0x3] }
  0x1c   : > { %1167 = vmatprep.subr.msk.mxu1 %vm347_vm0, %v336_v7  ;;  %1132 = vmatmul.mubr.msk.f32.vlgmr.msra.gmra.mxu0 %vm337_vm1, %v332_v8  ;;  %v1489_v49 = vrot.slane %v1146_v43, %v1479_v41  ;;  %v1492_v52 = vrot.slane %v1146_v43, %v1486_v46  ;;  %v1137_v43 = vld [vmem:[%s1861_s8 + $0x2] sm:$0x3] }
  0x1d   : > { %422 = vmatprep.mubr.f32.mxu0 %v1283_v0  ;;  %1168 = vmatpush1.msk.msra.mxu1 %vm347_vm0, %v331_v5 }
  0x1e   : > { %514 = vperm.xlu0 %1218, %v494_v9   ;;  %1134 = vmatmul.mubr.msk.f32.vlgmr.msra.gmra.mxu1 %vm337_vm1, %v334_v25  ;;  %v1156_v9 = vld [vmem:[%s1857_s4 + $0x80] sm:$0xff] }
  0x1f   : > { %565 = vperm.xlu1 %1219, %v1135_v10   ;;  %1036 = vmatprep.mubr.f32.mxu1 %v1283_v0  ;;  %v926_v10 = vld [vmem:[%s1858_s5 + $0x8] sm:$0xff] }
  0x20   : > { %1133 = vmatmul.mubr.msk.f32.gmra.mxu0 %vm337_vm1, %v333_v11  ;;  %v925_v11 = vld [vmem:[%s1858_s5] sm:$0xff] }
  0x22   : > { %621 = vperm.xlu0 %1218, %v1139_v12   ;;  %v471_v12 = vld [vmem:[%s1856_s3] sm:$0xff] }
  0x23   : > { %616 = vperm.xlu1 %1219, %v1138_v13   ;;  %v962_v13 = vld [vmem:[%s1860_s7] sm:$0xff] }
  0x26   : > { %672 = vperm.xlu0 %1218, %v1142_v14  }
  0x27   : > { %667 = vperm.xlu1 %1219, %v1141_v15  }
  0x2a   : > { %710 = vperm.xlu0 %1218, %v1145_v16  }
  0x2b   : > { %705 = vperm.xlu1 %1219, %v1144_v17  }
  0x2e   : > { %761 = vperm.xlu0 %1218, %v1148_v18  }
  0x2f   : > { %756 = vperm.xlu1 %1219, %v1147_v19  }
  0x32   : > { %812 = vperm.xlu0 %1218, %v1151_v20  }
  0x33   : > { %807 = vperm.xlu1 %1219, %v1150_v21  }
  0x36   : > { %863 = vperm.xlu0 %1218, %v1154_v22  }
  0x37   : > { %858 = vperm.xlu1 %1219, %v1153_v23  }
  0x3a   : > { %914 = vperm.xlu0 %1218, %v1157_v24  }
  0x91   : > { %v1470_v26 = vpop.permute.xlu1 %519  ;;  %v445_v28 = vpop.permute.xlu0 %444 }
  0x95   : > { %v440_v31 = vpop.permute.xlu0 %439 }
  0x96   : > { %v1472_v27 = vpop.permute.xlu1 %570 }
  0x99   : > { %v1551_v14 = vpop.permute.xlu0 %514 }
  0x9a   : > { %v1474_v29 = vpop.permute.xlu1 %565 }
  0x9d   : > { %v1553_v15 = vpop.permute.xlu0 %621 }
  0x9e   : > { %v1476_v33 = vpop.permute.xlu1 %616 }
  0xa1   : > { %v1555_v16 = vpop.permute.xlu0 %672 }
  0xa2   : > { %v1481_v42 = vpop.permute.xlu1 %667 }
  0xa5   : > { %v1557_v17 = vpop.permute.xlu0 %710 }
  0xa6   : > { %v706_v54 = vpop.permute.xlu1 %705 }
  0xa9   : > { %v1559_v18 = vpop.permute.xlu0 %761 }
  0xaa   : > { %v1561_v19 = vpop.permute.xlu1 %756 }
  0xad   : > { %v1563_v20 = vpop.permute.xlu0 %812 }
  0xae   : > { %v1565_v21 = vpop.permute.xlu1 %807 }
  0xb1   : > { %v1567_v22 = vpop.permute.xlu0 %863 }
  0xb2   : > { %v1569_v23 = vpop.permute.xlu1 %858 }
  0xb5   : > { %v1571_v24 = vpop.permute.xlu0 %914 }
  0xdc   : > { %v418_v32 = vpop.f32.mrf.mxu0 }
  0xdd   : > { %v447_v34 = vadd.f32 %v440_v31, %v418_v32 }
  0xde   : > { %v420_v36 = vpop.f32.mrf.mxu0 }
  0xdf   : > { %v451_v37 = vadd.f32 3.0, %v447_v34  ;;  %v448_v38 = vadd.f32 %v440_v31, %v420_v36 }
  0xe0   : > { %v424_v53 = vpop.f32.mrf.mxu0 }
  0xe1   : > { %v455_v39 = vmax.f32 %v451_v37, 0.0  ;;  %v452_v40 = vadd.f32 3.0, %v448_v38  ;;  %v449_v57 = vadd.f32 %v445_v28, %v424_v53 }
  0xe2   : > { %v426_v63 = vpop.f32.mrf.mxu0 }
  0xe3   : > { %v459_v44 = vmin.f32 %v455_v39, 6.0  ;;  %v456_v45 = vmax.f32 %v452_v40, 0.0  ;;  %v453_v61 = vadd.f32 3.0, %v449_v57  ;;  %v450_v1 = vadd.f32 %v445_v28, %v426_v63 }
  0xe4   : > { %v1574_v39 = vand.u32 127, %v487_v30  ;;  %v1588_v30 = vrot.slane %v1137_v43, %v1479_v41 }
  0xe5   : > { %v463_v47 = vmul.f32 %v459_v44, %v447_v34  ;;  %v460_v48 = vmin.f32 %v456_v45, 6.0  ;;  %v457_v62 = vmax.f32 %v453_v61, 0.0  ;;  %v454_v3 = vadd.f32 3.0, %v450_v1  ;;  %v496_v44 = vld [vmem:[%s1861_s8] sm:$0x3] }
  0xe6   : > { %vm538_vm2 = vcmp.lt.s32.totalorder %v1574_v39, 16  ;;  %vm489_vm3 = vcmp.lt.s32.totalorder %v1574_v39, 17  ;;  %vm589_vm4 = vcmp.lt.s32.totalorder %v1574_v39, 15  ;;  %vm640_vm5 = vcmp.lt.s32.totalorder %v1574_v39, 1 }
  0xe7   : > { %v467_v50 = vmul.f32 0.16666667, %v463_v47  ;;  %v464_v51 = vmul.f32 %v460_v48, %v448_v38  ;;  %v461_v0 = vmin.f32 %v457_v62, 6.0  ;;  %v458_v5 = vmax.f32 %v454_v3, 0.0  ;;  %v1140_v47 = vld [vmem:[%s1861_s8 + $0x4] sm:$0x3] }
  0xe8   : > { %v1591_v48 = vrot.slane %v1137_v43, %v1486_v46  ;;  %vm729_vm6 = vcmp.lt.s32.totalorder %v1574_v39, 127  ;;  %vm780_vm7 = vcmp.lt.s32.totalorder %v1574_v39, 113  ;;  %vm831_vm8 = vcmp.lt.s32.totalorder %v1574_v39, 112 }
  0xe9   : > { %v468_v55 = vmul.f32 0.16666667, %v464_v51  ;;  %479 = vrot.lane.b32.xlu1 %v467_v50, %s1285_s25  ;;  %v699_v56 = vmul.f32 %v1489_v49, %v467_v50  ;;  %v465_v2 = vmul.f32 %v461_v0, %v449_v57  ;;  %v462_v6 = vmin.f32 %v458_v5, 6.0 }
  0xea   : > { %v1595_v51 = vrot.slane %v496_v44, %v1479_v41  ;;  %v1608_v57 = vrot.slane %v1140_v47, %v1479_v41  ;;  %vm882_vm9 = vcmp.lt.s32.totalorder %v1574_v39, 111 }
  0xeb   : > { %v700_v58 = vmul.f32 %v1492_v52, %v468_v55  ;;  %v1497_v59 = vmul.f32 %v706_v54, %v699_v56  ;;  %483 = vrot.lane.b32.xlu0 %v468_v55, %s1285_s25  ;;  %v1508_v4 = vmul.f32 0.16666667, %v465_v2  ;;  %v466_v7 = vmul.f32 %v462_v6, %v450_v1 }
  0xec   : > { %v1605_v56 = vrot.slane %v496_v44, %v1486_v46 }
  0xed   : > { %v1500_v60 = vmul.f32 %v706_v54, %v700_v58  ;;  %530 = vrot.lane.b32.xlu1 %v467_v50, %s1286_s26  ;;  %v1518_v8 = vmul.f32 0.16666667, %v466_v7  ;;  %v1611_v58 = vrot.slane %v1140_v47, %v1486_v46 }
  0xef   : > { %534 = vrot.lane.b32.xlu0 %v468_v55, %s1286_s26 }
  0xf1   : > { %581 = vrot.lane.b32.xlu1 %v467_v50, %s1287_s24 }
  0xf3   : > { %585 = vrot.lane.b32.xlu0 %v468_v55, %s1287_s24 }
  0xf5   : > { %632 = vrot.lane.b32.xlu1 %v467_v50, %s1288_s27 }
  0xf7   : > { %636 = vrot.lane.b32.xlu0 %v468_v55, %s1288_s27 }
  0xf9   : > { %721 = vrot.lane.b32.xlu1 %v467_v50, %s1289_s28 }
  0xfb   : > { %725 = vrot.lane.b32.xlu0 %v468_v55, %s1289_s28 }
  0xfd   : > { %772 = vrot.lane.b32.xlu1 %v467_v50, %s1290_s29 }
  0xff   : > { %776 = vrot.lane.b32.xlu0 %v468_v55, %s1290_s29 }
 0x101   : > { %532 = vrot.lane.b32.xlu1 %v1508_v4, %s1286_s26 }
 0x103   : > { %481 = vrot.lane.b32.xlu0 %v1508_v4, %s1285_s25 }
 0x105   : > { %583 = vrot.lane.b32.xlu1 %v1508_v4, %s1287_s24 }
 0x107   : > { %827 = vrot.lane.b32.xlu0 %v468_v55, %s1291_s14 }
 0x109   : > { %634 = vrot.lane.b32.xlu1 %v1508_v4, %s1288_s27 }
 0x10b   : > { %874 = vrot.lane.b32.xlu0 %v467_v50, %s1292_s16 }
 0x10d   : > { %723 = vrot.lane.b32.xlu1 %v1508_v4, %s1289_s28 }
 0x10f   : > { %536 = vrot.lane.b32.xlu0 %v1518_v8, %s1286_s26 }
 0x111   : > { %774 = vrot.lane.b32.xlu1 %v1508_v4, %s1290_s29 }
 0x113   : > { %587 = vrot.lane.b32.xlu0 %v1518_v8, %s1287_s24  ;;  %s1166_s24 = sshll.u32 %s1365_s13, 8  ;;  %s1225_s13 = sshll.u32 %s1293_s22, 4  ;;  %s1226_s13 = int_to_ptr.vmem [resolvable:$false] %s1225_s13 }
 0x114   : > { %s1227_s23 = scalar_lea.vmem %s1226_s13, 512 }
 0x115   : > { %825 = vrot.lane.b32.xlu1 %v1508_v4, %s1291_s14 }
 0x117   : > { %638 = vrot.lane.b32.xlu0 %v1518_v8, %s1288_s27 }
 0x119   : > { %485 = vrot.lane.b32.xlu1 %v1518_v8, %s1285_s25  ;;  %s323_s25 = sand.u32 1, %s1273_s10  }
 0x11a   : > { %s1127_s26 = sshll.u32 %s323_s25, 4  ;;  %s1050_s17 = scalar_lea.sflag [#allocation3], %s323_s25 }
 0x11b   : > { %727 = vrot.lane.b32.xlu0 %v1518_v8, %s1289_s28  ;;  %s325_s27 = scalar_lea.vmem [#allocation2], %s1127_s26 }
 0x11c   : > { %s1064_s28 = sshll.u32 %s325_s27, 4  ;;  %s1065_s28 = int_to_ptr.vmem [resolvable:$true] %s1064_s28 }
 0x11d   : > { %823 = vrot.lane.b32.xlu1 %v467_v50, %s1291_s14  ;;  %s1221_s21 = scalar_lea.vmem %s1065_s28, 256  ;;  %p1228_p0 = scmp.lt.s32.totalorder %s1065_s28, %s1226_s13 }
 0x11e   : > { %p1222_p11 = scmp.ne.s32.totalorder %s1065_s28, %s1221_s21  ;;  %p1229_p1 = scmp.lt.s32.totalorder %s1227_s23, %s1221_s21 }
 0x11f   : > { %778 = vrot.lane.b32.xlu0 %v1518_v8, %s1290_s29 }
 0x120   : > { %p1223_p12 = pnand %p1222_p11, %p1382_p5  ;;  %p1230_p2 = por %p1229_p1, %p1228_p0 }
 0x121   : > { %876 = vrot.lane.b32.xlu1 %v1508_v4, %s1292_s16 }
 0x122   : > { %p1224_p13 = pneg %p1223_p12 }
 0x123   : > { %829 = vrot.lane.b32.xlu0 %v1518_v8, %s1291_s14 }
 0x124   : > { %p1231_p3 = pnand %p1230_p2, %p1224_p13 }
 0x125   : > { %909 = vperm.xlu1 %1219, %v1156_v9  }
 0x127   : > { %880 = vrot.lane.b32.xlu0 %v1518_v8, %s1292_s16 }
 0x129   : > { %878 = vrot.lane.b32.xlu1 %v468_v55, %s1292_s16  ;;  %v1143_v55 = vld [vmem:[%s1861_s8 + $0x6] sm:$0x3]  ;;  %s1062_s16 = scalar_lea.hbm %s1862_s9, %s1166_s24 }
 0x12a   : > { %v1627_v5 = vrot.slane %v1143_v55, %v1479_v41  ;;  %v1630_v6 = vrot.slane %v1143_v55, %v1486_v46 }
 0x12b   : > { %934 = vperm.xlu0 %1218, %v926_v10  }
 0x12d   : > { %929 = vperm.xlu1 %1219, %v925_v11  }
 0x12f   : > { %474 = vperm.xlu0 %1218, %v471_v12  }
 0x131   : > { %965 = vperm.xlu1 %1219, %v962_v13  }
 0x15b   : > { %v480_v25 = vpop.permute.xlu1 %479 }
 0x15d   : > { %v484_v28 = vpop.permute.xlu0 %483 }
 0x15e   : > { %v490_v62 = vsel %vm489_vm3, %v480_v25, %v484_v28  ;;  %v492_v63 = vsel %vm489_vm3, %v484_v28, %v480_v25 }
 0x15f   : > { %v531_v31 = vpop.permute.xlu1 %530  ;;  %v508_v11 = vmul.f32 %v1595_v51, %v492_v63  ;;  %v509_v12 = vmul.f32 %v1605_v56, %v490_v62  ;;  %v1152_v62 = vld [vmem:[%s1861_s8 + $0xc] sm:$0x3] }
 0x161   : > { %v535_v32 = vpop.permute.xlu0 %534  ;;  %v522_v43 = vmul.f32 %v1551_v14, %v508_v11  ;;  %v523_v44 = vmul.f32 %v1551_v14, %v509_v12  ;;  %v1677_v11 = vrot.slane %v1152_v62, %v1479_v41  ;;  %v1680_v12 = vrot.slane %v1152_v62, %v1486_v46 }
 0x162   : > { %v539_v53 = vsel %vm538_vm2, %v531_v31, %v535_v32  ;;  %v541_v54 = vsel %vm538_vm2, %v535_v32, %v531_v31 }
 0x163   : > { %v582_v34 = vpop.permute.xlu1 %581  ;;  %v559_v2 = vmul.f32 %v1588_v30, %v541_v54  ;;  %v560_v3 = vmul.f32 %v1591_v48, %v539_v53 }
 0x165   : > { %v586_v35 = vpop.permute.xlu0 %585  ;;  %v573_v31 = vmul.f32 %v1474_v29, %v559_v2  ;;  %v574_v32 = vmul.f32 %v1474_v29, %v560_v3 }
 0x166   : > { %v590_v0 = vsel %vm589_vm4, %v582_v34, %v586_v35  ;;  %v592_v1 = vsel %vm589_vm4, %v586_v35, %v582_v34 }
 0x167   : > { %v633_v36 = vpop.permute.xlu1 %632  ;;  %v610_v13 = vmul.f32 %v1608_v57, %v592_v1  ;;  %v611_v25 = vmul.f32 %v1611_v58, %v590_v0  ;;  %v577_v63 = vadd.f32 %v573_v31, %v522_v43  ;;  %v578_v0 = vadd.f32 %v574_v32, %v523_v44 }
 0x168   : > { %v701_v44 = vmul.f32 %v1489_v49, %v1508_v4 }
 0x169   : > { %v637_v37 = vpop.permute.xlu0 %636  ;;  %v624_v47 = vmul.f32 %v1476_v33, %v610_v13  ;;  %v625_v29 = vmul.f32 %v1476_v33, %v611_v25 }
 0x16a   : > { %v641_v9 = vsel %vm640_vm5, %v633_v36, %v637_v37  ;;  %v643_v10 = vsel %vm640_vm5, %v637_v37, %v633_v36  ;;  %v1149_v36 = vld [vmem:[%s1861_s8 + $0xa] sm:$0x3]  ;;  %v1714_v4 = vmul.f32 %v1557_v17, %v701_v44 }
 0x16b   : > { %v722_v38 = vpop.permute.xlu1 %721  ;;  %v661_v34 = vmul.f32 %v1627_v5, %v643_v10  ;;  %v662_v35 = vmul.f32 %v1630_v6, %v641_v9  ;;  %v1659_v54 = vrot.slane %v1149_v36, %v1479_v41  ;;  %v1662_v55 = vrot.slane %v1149_v36, %v1486_v46 }
 0x16c   : > { %v628_v9 = vadd.f32 %v624_v47, %v577_v63  ;;  %v629_v10 = vadd.f32 %v625_v29, %v578_v0  ;;  %v702_v47 = vmul.f32 %v1492_v52, %v1518_v8  ;;  %v1155_v0 = vld [vmem:[%s1861_s8 + $0xe] sm:$0x3] }
 0x16d   : > { %v726_v40 = vpop.permute.xlu0 %725  ;;  %v675_v14 = vmul.f32 %v1481_v42, %v661_v34  ;;  %v676_v1 = vmul.f32 %v1481_v42, %v662_v35 }
 0x16e   : > { %v730_v2 = vsel %vm729_vm6, %v722_v38, %v726_v40  ;;  %v732_v3 = vsel %vm729_vm6, %v726_v40, %v722_v38  ;;  %v1717_v8 = vmul.f32 %v1557_v17, %v702_v47 }
 0x16f   : > { %v773_v45 = vpop.permute.xlu1 %772  ;;  %v679_v31 = vadd.f32 %v675_v14, %v628_v9  ;;  %v680_v32 = vadd.f32 %v676_v1, %v629_v10  ;;  %v750_v34 = vmul.f32 %v1659_v54, %v730_v2  ;;  %v751_v38 = vmul.f32 %v1662_v55, %v732_v3 }
 0x170   : > { %v845_v3 = vrot.slane %v1155_v0, %v1479_v41 }
 0x171   : > { %v777_v50 = vpop.permute.xlu0 %776  ;;  %v764_v29 = vmul.f32 %v1561_v19, %v750_v34  ;;  %v765_v62 = vmul.f32 %v1561_v19, %v751_v38  ;;  %v1158_v19 = vld [vmem:[%s1861_s8 + $0x10] sm:$0x3] }
 0x172   : > { %v781_v42 = vsel %vm780_vm7, %v773_v45, %v777_v50  ;;  %v783_v25 = vsel %vm780_vm7, %v777_v50, %v773_v45  ;;  %v717_v45 = vadd.f32 %v1497_v59, %v679_v31  ;;  %v718_v50 = vadd.f32 %v1500_v60, %v680_v32 }
 0x173   : > { %v1614_v61 = vpop.permute.xlu1 %532  ;;  %v801_v35 = vmul.f32 %v1677_v11, %v781_v42  ;;  %v802_v36 = vmul.f32 %v1680_v12, %v783_v25  ;;  %v1734_v34 = vrot.slane %v1158_v19, %v1479_v41  ;;  %v1737_v38 = vrot.slane %v1158_v19, %v1486_v46 }
 0x174   : > { %v769_v1 = vadd.f32 %v765_v62, %v718_v50 }
 0x175   : > { %v1632_v7 = vpop.permute.xlu0 %481  ;;  %v815_v14 = vmul.f32 %v1565_v21, %v801_v35  ;;  %v816_v49 = vmul.f32 %v1565_v21, %v802_v36  ;;  %v768_v21 = vadd.f32 %v764_v29, %v717_v45 }
 0x177   : > { %v1642_v28 = vpop.permute.xlu1 %583  ;;  %v819_v25 = vadd.f32 %v815_v14, %v768_v21  ;;  %v820_v31 = vadd.f32 %v816_v49, %v769_v1 }
 0x179   : > { %v1651_v37 = vpop.permute.xlu0 %827 }
 0x17b   : > { %v635_v53 = vpop.permute.xlu1 %634 }
 0x17d   : > { %v1670_v33 = vpop.permute.xlu0 %874 }
 0x17f   : > { %v724_v13 = vpop.permute.xlu1 %723 }
 0x181   : > { %v537_v40 = vpop.permute.xlu0 %536 }
 0x182   : > { %v540_v52 = vsel %vm538_vm2, %v1614_v61, %v537_v40  ;;  %v542_v59 = vsel %vm538_vm2, %v537_v40, %v1614_v61  ;;  %v849_v61 = vrot.slane %v1155_v0, %v1486_v46 }
 0x183   : > { %v1690_v43 = vpop.permute.xlu1 %774  ;;  %v561_v9 = vmul.f32 %v1588_v30, %v542_v59  ;;  %v562_v10 = vmul.f32 %v1591_v48, %v540_v52 }
 0x185   : > { %v588_v63 = vpop.permute.xlu0 %587  ;;  %v575_v47 = vmul.f32 %v1472_v27, %v561_v9 }
 0x186   : > { %v591_v17 = vsel %vm589_vm4, %v1642_v28, %v588_v63  ;;  %v593_v42 = vsel %vm589_vm4, %v588_v63, %v1642_v28 }
 0x187   : > { %v1711_v60 = vpop.permute.xlu1 %825  ;;  %v612_v41 = vmul.f32 %v1608_v57, %v593_v42  ;;  %v613_v35 = vmul.f32 %v1611_v58, %v591_v17 }
 0x189   : > { %v639_v2 = vpop.permute.xlu0 %638 }
 0x18a   : > { %v642_v30 = vsel %vm640_vm5, %v635_v53, %v639_v2  ;;  %v644_v48 = vsel %vm640_vm5, %v639_v2, %v635_v53  ;;  %v576_v53 = vmul.f32 %v1472_v27, %v562_v10 }
 0x18b   : > { %v486_v32 = vpop.permute.xlu1 %485  ;;  %v664_v57 = vmul.f32 %v1630_v6, %v642_v30  ;;  %v626_v6 = vmul.f32 %v1553_v15, %v612_v41 }
 0x18c   : > { %v491_v40 = vsel %vm489_vm3, %v1632_v7, %v486_v32  ;;  %v493_v28 = vsel %vm489_vm3, %v486_v32, %v1632_v7  ;;  %v663_v7 = vmul.f32 %v1627_v5, %v644_v48 }
 0x18d   : > { %v510_v46 = vmul.f32 %v1595_v51, %v493_v28  ;;  %v511_v36 = vmul.f32 %v1605_v56, %v491_v40  ;;  %v728_v44 = vpop.permute.xlu0 %727 }
 0x18e   : > { %v731_v45 = vsel %vm729_vm6, %v724_v13, %v728_v44  ;;  %v733_v50 = vsel %vm729_vm6, %v728_v44, %v724_v13  ;;  %v627_v13 = vmul.f32 %v1553_v15, %v613_v35  ;;  %v677_v52 = vmul.f32 %v1555_v16, %v663_v7 }
 0x18f   : > { %v524_v58 = vmul.f32 %v1470_v26, %v510_v46  ;;  %v525_v51 = vmul.f32 %v1470_v26, %v511_v36  ;;  %v824_v56 = vpop.permute.xlu1 %823  ;;  %v752_v29 = vmul.f32 %v1659_v54, %v731_v45  ;;  %v753_v27 = vmul.f32 %v1662_v55, %v733_v50 }
 0x190   : > { %v832_v62 = vsel %vm831_vm8, %v824_v56, %v1651_v37  ;;  %v834_v5 = vsel %vm831_vm8, %v1651_v37, %v824_v56  ;;  %v678_v37 = vmul.f32 %v1555_v16, %v664_v57 }
 0x191   : > { %v579_v26 = vadd.f32 %v575_v47, %v524_v58  ;;  %v580_v63 = vadd.f32 %v576_v53, %v525_v51  ;;  %v779_v0 = vpop.permute.xlu0 %778  ;;  %v852_v14 = vmul.f32 %v845_v3, %v832_v62  ;;  %v853_v49 = vmul.f32 %v849_v61, %v834_v5 }
 0x192   : > { %v782_v54 = vsel %vm780_vm7, %v1690_v43, %v779_v0  ;;  %v784_v55 = vsel %vm780_vm7, %v779_v0, %v1690_v43  ;;  %v766_v15 = vmul.f32 %v1559_v18, %v752_v29  ;;  %v767_v21 = vmul.f32 %v1559_v18, %v753_v27 }
 0x193   : > { %v630_v59 = vadd.f32 %v626_v6, %v579_v26  ;;  %v631_v19 = vadd.f32 %v627_v13, %v580_v63  ;;  %v866_v1 = vmul.f32 %v1569_v23, %v852_v14  ;;  %v867_v2 = vmul.f32 %v1569_v23, %v853_v49  ;;  %v877_v46 = vpop.permute.xlu1 %876 }
 0x194   : > { %v803_v17 = vmul.f32 %v1677_v11, %v782_v54  ;;  %v804_v43 = vmul.f32 %v1680_v12, %v784_v55 }
 0x195   : > { %v681_v9 = vadd.f32 %v677_v52, %v630_v59  ;;  %v682_v10 = vadd.f32 %v678_v37, %v631_v19  ;;  %v830_v42 = vpop.permute.xlu0 %829  ;;  %v870_v18 = vadd.f32 %v866_v1, %v819_v25  ;;  %v871_v30 = vadd.f32 %v867_v2, %v820_v31 }
 0x196   : > { %v833_v16 = vsel %vm831_vm8, %v1711_v60, %v830_v42  ;;  %v835_v32 = vsel %vm831_vm8, %v830_v42, %v1711_v60  ;;  %v817_v12 = vmul.f32 %v1563_v20, %v803_v17  ;;  %v818_v35 = vmul.f32 %v1563_v20, %v804_v43 }
 0x197   : > { %v719_v48 = vadd.f32 %v1714_v4, %v681_v9  ;;  %v720_v23 = vadd.f32 %v1717_v8, %v682_v10  ;;  %v854_v40 = vmul.f32 %v845_v3, %v833_v16  ;;  %v855_v28 = vmul.f32 %v849_v61, %v835_v32  ;;  %v961_v16 = vld [vmem:[%s1859_s6] sm:$0xff]  ;;  %v430_v32 = vpop.f32.mrf.mxu1 }
 0x199   : > { %v770_v11 = vadd.f32 %v766_v15, %v719_v48  ;;  %v771_v41 = vadd.f32 %v767_v21, %v720_v23  ;;  %v881_v36 = vpop.permute.xlu0 %880  ;;  %v868_v44 = vmul.f32 %v1567_v22, %v854_v40  ;;  %v869_v60 = vmul.f32 %v1567_v22, %v855_v28 }
 0x19a   : > { %v884_v25 = vsel %vm882_vm9, %v877_v46, %v881_v36  ;;  %v886_v4 = vsel %vm882_vm9, %v881_v36, %v877_v46 }
 0x19b   : > { %v821_v8 = vadd.f32 %v817_v12, %v770_v11  ;;  %v822_v3 = vadd.f32 %v818_v35, %v771_v41  ;;  %v905_v61 = vmul.f32 %v1734_v34, %v884_v25  ;;  %v906_v31 = vmul.f32 %v1737_v38, %v886_v4 }
 0x19d   : > { %v919_v20 = vmul.f32 %v1571_v24, %v905_v61  ;;  %v920_v47 = vmul.f32 %v1571_v24, %v906_v31  ;;  %v872_v53 = vadd.f32 %v868_v44, %v821_v8  ;;  %v873_v45 = vadd.f32 %v869_v60, %v822_v3 }
 0x19f   : > { %v923_v50 = vadd.f32 %v919_v20, %v872_v53  ;;  %v924_v22 = vadd.f32 %v920_v47, %v873_v45 }
 0x1a0   : > { %v910_v7 = vpop.permute.xlu1 %909 }
 0x1a4   : > { %v879_v57 = vpop.permute.xlu1 %878 }
 0x1a5   : > { %v883_v58 = vsel %vm882_vm9, %v1670_v33, %v879_v57  ;;  %v885_v51 = vsel %vm882_vm9, %v879_v57, %v1670_v33 }
 0x1a6   : > { %v903_v56 = vmul.f32 %v1734_v34, %v883_v58  ;;  %v904_v29 = vmul.f32 %v1737_v38, %v885_v51  ;;  %v935_v27 = vpop.permute.xlu0 %934 }
 0x1a7   : > { %v939_v24 = vadd.f32 %v935_v27, %v923_v50  ;;  %v940_v62 = vadd.f32 %v935_v27, %v924_v22 }
 0x1a8   : > { %v917_v5 = vmul.f32 %v910_v7, %v903_v56  ;;  %v918_v6 = vmul.f32 %v910_v7, %v904_v29  ;;  %v930_v54 = vpop.permute.xlu1 %929 }
 0x1a9   : > { %v943_v13 = vadd.f32 3.0, %v939_v24  ;;  %v944_v26 = vadd.f32 3.0, %v940_v62 }
 0x1aa   : > { %v921_v63 = vadd.f32 %v917_v5, %v870_v18  ;;  %v922_v0 = vadd.f32 %v918_v6, %v871_v30  ;;  %v432_v18 = vpop.f32.mrf.mxu1  ;;  %v475_v30 = vpop.permute.xlu0 %474 }
 0x1ab   : > { %v947_v14 = vmax.f32 %v943_v13, 0.0  ;;  %v948_v49 = vmax.f32 %v944_v26, 0.0  ;;  %v477_v40 = vadd.f32 %v475_v30, %v430_v32  ;;  %v478_v41 = vadd.f32 %v475_v30, %v432_v18 }
 0x1ac   : > { %v937_v55 = vadd.f32 %v930_v54, %v921_v63  ;;  %v938_v52 = vadd.f32 %v930_v54, %v922_v0  ;;  %v966_v48 = vpop.permute.xlu1 %965 }
 0x1ad   : > { %v951_v39 = vmin.f32 %v947_v14, 6.0  ;;  %v952_v33 = vmin.f32 %v948_v49, 6.0 }
 0x1ae   : > { %v941_v37 = vadd.f32 3.0, %v937_v55  ;;  %v942_v34 = vadd.f32 3.0, %v938_v52 }
 0x1af   : > { %v955_v59 = vmul.f32 %v951_v39, %v939_v24  ;;  %v956_v38 = vmul.f32 %v952_v33, %v940_v62 }
 0x1b0   : > { %v945_v19 = vmax.f32 %v941_v37, 0.0  ;;  %v946_v15 = vmax.f32 %v942_v34, 0.0 }
 0x1b1   : > { %v959_v21 = vmul.f32 0.16666667, %v955_v59  ;;  %v960_v1 = vmul.f32 0.16666667, %v956_v38 }
 0x1b2   : > { %v949_v2 = vmin.f32 %v945_v19, 6.0  ;;  %v950_v9 = vmin.f32 %v946_v15, 6.0 }
 0x1b3   : > { %1000 = vmatprep.subr.mxu1 %v960_v1 }
 0x1b4   : > { %v953_v10 = vmul.f32 %v949_v2, %v937_v55  ;;  %v954_v17 = vmul.f32 %v950_v9, %v938_v52  ;;  %1001 = vmatpush1.msra.mxu1 %v959_v21 }
 0x1b6   : > { %v957_v43 = vmul.f32 0.16666667, %v953_v10  ;;  %v958_v42 = vmul.f32 0.16666667, %v954_v17 }
 0x1b8   : > { %1002 = vmatprep.subr.mxu1 %v958_v42 }
 0x1b9   : > { %1003 = vmatpush1.msra.mxu1 %v957_v43 }
 0x1ba   : > { %1159 = vmatmul.mubr.msk.f32.vlgmr.msra.gmra.mxu1 %vm968_vm10, %v961_v16 }
 0x27a   : > { %v1038_v23 = vpop.f32.mrf.mxu1 }
 0x27b   : > { %v1039_v28 = vadd.f32 %v1038_v23, %v966_v48 }
 0x27c   : > { %v1040_v11 = vpop.f32.mrf.mxu1 }
 0x27d   : > { %v1043_v12 = vadd.f32 %v1039_v28, %v477_v40  ;;  %v1041_v35 = vadd.f32 %v1040_v11, %v966_v48 }
 0x27f   : > { %v1045_v46 = vmax.f32 %v1043_v12, 0.0  ;;  %v1044_v36 = vadd.f32 %v1041_v35, %v478_v41 }
 0x281   : > { %1047 = vst [vmem:[%s325_s27] sm:$0xff] %v1045_v46  ;;  %v1046_v44 = vmax.f32 %v1044_v36, 0.0 }
 0x283   : > { %1048 = vst [vmem:[%s325_s27 + $0x8] sm:$0xff] %v1046_v44 }
 0x284   : > { %1234 = shalt.err (!%p1231_p3)
}
 0x285   : > { %s1235_s26 = scalar_lea.hbm %s1062_s16, 256  ;;  %s1239_s27 = scalar_lea.hbm %s1862_s9, 512 }
 0x286   : > { %p1236_p4 = scmp.ne.s32.totalorder %s1062_s16, %s1235_s26  ;;  %p1240_p9 = scmp.lt.s32.totalorder %s1062_s16, %s1862_s9 }
 0x287   : > { %p1241_p10 = scmp.lt.s32.totalorder %s1239_s27, %s1235_s26 }
 0x288   : > { %p1237_p7 = pnand %p1236_p4, %p1382_p5 }
 0x289   : > { %p1242_p11 = por %p1241_p10, %p1240_p9 }
 0x28a   : > { %p1238_p8 = pneg %p1237_p7 }
 0x28c   : > { %p1243_p12 = pnand %p1242_p11, %p1238_p8 }
 0x28e   : > { %1246 = shalt.err (!%p1243_p12)
}
 0x28f   : > { %1169 = dma.vmem_to_hbm [thread:$0]  (%p1382_p5), %s1065_s28, 256, %s1062_s16, %s1050_s17  }
 0x290 PF: > { %p1175_p13 = scmp.ge.s32.totalorder %s1281_s12, 2  ;;  %s1076_s21 = sand.u32 1, %s1269_s30  }
 0x291   : > { %s1077_s22 = scalar_lea.sflag [#allocation3], %s1076_s21 }
 0x292   : > { %p1172_p0 = pnand %p1175_p13, %p1386_p6 }
 0x294   : > { %p1173_p1 = pneg %p1172_p0 }
 0x296   : > { %1264 = dma.done.wait (%p1173_p1), %s1077_s22, 256  }
 0x297   : > { %1266 = vsyncadd (%p1173_p1), %s1077_s22, 4294967040  ;;  %p19_p2 = scmp.ge.s32.totalorder %s1369_s15, 4   ;;  %s1865_s30 = smov %s1273_s10 }
 0x298   : > { %s1866_s10 = smov %s1277_s11  ;;  %s1867_s11 = smov %s1380_s18 }
 0x299   : > { %s1868_s12 = smov %s1369_s15  ;;  %21 = sbr.rel (!%p19_p2) target bundleno = 3 (0x3), region = 107 }
 0x29e   :  { %1082 = vsyncpa [#allocation3], 1 }
 0x29f   :  { %1084 = vsyncpa [#allocation3 + $0x1], 1 }

</bundles_post_ra>
